<compile_context>
chip_gen: v7x
topology: tpu7x:2x2x1
jax: 0.10.0
libtpu: 0.0.40
codegen_flags: <defaults>
</compile_context>

<pallas_src>
import functools

import jax
import jax.numpy as jnp
from jax.experimental import pallas as pl
from jax.experimental.pallas import tpu as pltpu

EPS = 1e-5                       # nn.BatchNorm2d default eps
P_DROP = 0.4                     # dropout_rate
INV_KEEP = 1.0 / (1.0 - P_DROP)
_DROP_THRESHOLD = int(round(P_DROP * (1 << 32)))   # drop iff hash_u32 < threshold


def _tcn_act_kernel(seed_ref, x_ref, gamma_ref, beta_ref, o_ref):
    # x_ref / o_ref: (N, TILE_C, H*W) block.
    # gamma_ref / beta_ref: (TILE_C, 1), already pre-scaled by 1/(1-p) on the host.
    x = x_ref[...].astype(jnp.float32)
    n, tc, hw = x.shape
    inv_count = 1.0 / float(n * hw)

    # --- BatchNorm2d, training mode (biased batch stats), one-pass sum/sumsq ---
    s = jnp.sum(x, axis=0)                        # (TILE_C, HW)  cheap cross-vreg adds
    ss = jnp.sum(x * x, axis=0)                   # (TILE_C, HW)
    s = jnp.sum(s, axis=-1, keepdims=True)        # (TILE_C, 1)   XLU lane reduce
    ss = jnp.sum(ss, axis=-1, keepdims=True)      # (TILE_C, 1)
    mean = s * inv_count
    var = jnp.maximum(ss * inv_count - mean * mean, 0.0)
    inv_std = jax.lax.rsqrt(var + EPS)

    scale = gamma_ref[...] * inv_std              # (TILE_C, 1) includes 1/(1-p)
    shift = beta_ref[...] - mean * scale          # (TILE_C, 1)

    # --- BN affine + ReLU (dropout rescale already folded into scale/shift) ---
    y = jnp.maximum(x * scale[None] + shift[None], 0.0)

    # --- Dropout mask from a counter-based hash of the global element index ---
    seed = seed_ref[0]                            # int32 scalar (SMEM, scalar prefetch)
    c_base = pl.program_id(0) * tc
    c_total = pl.num_programs(0) * tc
    ni = jax.lax.broadcasted_iota(jnp.int32, x.shape, 0)
    ci = jax.lax.broadcasted_iota(jnp.int32, x.shape, 1) + c_base
    li = jax.lax.broadcasted_iota(jnp.int32, x.shape, 2)
    flat = (ni * c_total + ci) * hw + li          # unique global index (wrap is fine)

    h = flat.astype(jnp.uint32) ^ (seed.astype(jnp.uint32) * jnp.uint32(0x9E3779B9))
    h = h ^ (h >> 16)                             # murmur3 fmix32
    h = h * jnp.uint32(0x85EBCA6B)
    h = h ^ (h >> 13)
    h = h * jnp.uint32(0xC2B2AE35)
    h = h ^ (h >> 16)
    keep = h >= jnp.uint32(_DROP_THRESHOLD)       # P(keep) = 1 - p

    o_ref[...] = jnp.where(keep, y, 0.0).astype(o_ref.dtype)


@functools.partial(jax.jit, static_argnames=())
def tcn_activation_block(x_nchw, gamma, beta, seed_arr):
    """Forward pass of TCNActivationBlock.  x_nchw: (N, C, H, W)."""
    N, C, H, W = x_nchw.shape
    HW = H * W

    x3 = x_nchw.reshape(N, C, HW)                         # free reshape, no transpose
    gamma2 = (gamma.astype(jnp.float32) * INV_KEEP).reshape(C, 1)
    beta2 = (beta.astype(jnp.float32) * INV_KEEP).reshape(C, 1)

    # Multiple-of-8 channel tiles keep vreg sublanes packed; fall back to the full
    # channel dim when C is not a multiple of 8 (block == full dim is still legal).
    tile_c = 8 if C % 8 == 0 else C
    grid_c = C // tile_c

    out3 = pl.pallas_call(
        _tcn_act_kernel,
        out_shape=jax.ShapeDtypeStruct((N, C, HW), x_nchw.dtype),
        grid_spec=pltpu.PrefetchScalarGridSpec(
            num_scalar_prefetch=1,                        # seed lands in SMEM
            grid=(grid_c,),
            in_specs=[
                pl.BlockSpec((N, tile_c, HW), lambda c, seed: (0, c, 0)),
                pl.BlockSpec((tile_c, 1), lambda c, seed: (c, 0)),
                pl.BlockSpec((tile_c, 1), lambda c, seed: (c, 0)),
            ],
            out_specs=pl.BlockSpec((N, tile_c, HW), lambda c, seed: (0, c, 0)),
        ),
        compiler_params=pltpu.CompilerParams(
            dimension_semantics=("parallel",),            # channel tiles are independent
        ),
    )(seed_arr, x3, gamma2, beta2)

    return out3.reshape(N, C, H, W)


if __name__ == "__main__":
    key = jax.random.PRNGKey(0)
    N, C, H, W = 2, 4, 16, 16
    x = jax.random.normal(key, (N, C, H, W), dtype=jnp.float32)

    # PyTorch defaults are gamma=1, beta=0; use mildly non-trivial values.
    gamma = 1.0 + 0.1 * jnp.arange(C, dtype=jnp.float32)
    beta = 0.05 * jnp.arange(C, dtype=jnp.float32)
    seed = jnp.array([1234], dtype=jnp.int32)

    out = tcn_activation_block(x, gamma, beta, seed)
    out = jax.block_until_ready(out)

    assert out.shape == (N, C, H, W)
    assert out.dtype == jnp.float32

    # Sanity: kept elements must equal relu(batchnorm(x)) / (1 - p); dropped are zero.
    mean = jnp.mean(x, axis=(0, 2, 3), keepdims=True)
    var = jnp.var(x, axis=(0, 2, 3), keepdims=True)
    ref = jnp.maximum(
        (x - mean) * jax.lax.rsqrt(var + EPS) * gamma.reshape(1, C, 1, 1)
        + beta.reshape(1, C, 1, 1),
        0.0,
    ) * INV_KEEP
    kept = out != 0.0
    assert jnp.allclose(jnp.where(kept, out, ref), ref, rtol=1e-3, atol=1e-3)

    # Drop fraction among strictly-positive activations should be near p=0.4.
    pos = ref > 1e-6
    frac_dropped = jnp.sum((out == 0.0) & pos) / jnp.maximum(jnp.sum(pos), 1)
    assert 0.2 <= float(frac_dropped) <= 0.6

    print("KERNEL_OK")
</pallas_src>

<mosaic_0001>
module attributes {stable_mosaic.version = 11 : i64} {
  func.func @_tcn_act_kernel(%arg0: i32, %arg1: memref<1xi32, #tpu.memory_space<smem>>, %arg2: memref<2x4x256xf32, #tpu.memory_space<vmem>>, %arg3: memref<4x1xf32, #tpu.memory_space<vmem>>, %arg4: memref<4x1xf32, #tpu.memory_space<vmem>>, %arg5: memref<2x4x256xf32, #tpu.memory_space<vmem>>) attributes {dimension_semantics = [#tpu.dimension_semantics<parallel>], iteration_bounds = array<i64: 1>, scalar_prefetch = 1 : i64, scratch_operands = 0 : i64, tpu.core_type = #tpu.core_type<tc>, window_params = [{transform_indices = @transform_0, window_bounds = array<i64: 2, 4, 256>}, {transform_indices = @transform_1, window_bounds = array<i64: 4, 1>}, {transform_indices = @transform_2, window_bounds = array<i64: 4, 1>}, {transform_indices = @transform_3, window_bounds = array<i64: 2, 4, 256>}]} {
    %c0 = arith.constant 0 : index
    %c0_0 = arith.constant 0 : index
    %c0_1 = arith.constant 0 : index
    %0 = vector.load %arg2[%c0, %c0_0, %c0_1] : memref<2x4x256xf32, #tpu.memory_space<vmem>>, vector<2x4x256xf32>
    %cst = arith.constant dense<0.000000e+00> : vector<4x256xf32>
    %1 = vector.multi_reduction <add>, %0, %cst [0] : vector<2x4x256xf32> to vector<4x256xf32>
    %2 = arith.mulf %0, %0 : vector<2x4x256xf32>
    %cst_2 = arith.constant dense<0.000000e+00> : vector<4x256xf32>
    %3 = vector.multi_reduction <add>, %2, %cst_2 [0] : vector<2x4x256xf32> to vector<4x256xf32>
    %cst_3 = arith.constant dense<0.000000e+00> : vector<4xf32>
    %4 = vector.multi_reduction <add>, %1, %cst_3 [1] : vector<4x256xf32> to vector<4xf32>
    %5 = vector.shape_cast %4 : vector<4xf32> to vector<4x1xf32>
    %cst_4 = arith.constant dense<0.000000e+00> : vector<4xf32>
    %6 = vector.multi_reduction <add>, %3, %cst_4 [1] : vector<4x256xf32> to vector<4xf32>
    %7 = vector.shape_cast %6 : vector<4xf32> to vector<4x1xf32>
    %cst_5 = arith.constant 0.001953125 : f32
    %8 = vector.broadcast %cst_5 : f32 to vector<4x1xf32>
    %9 = arith.mulf %5, %8 : vector<4x1xf32>
    %cst_6 = arith.constant 0.001953125 : f32
    %10 = vector.broadcast %cst_6 : f32 to vector<4x1xf32>
    %11 = arith.mulf %7, %10 : vector<4x1xf32>
    %12 = arith.mulf %9, %9 : vector<4x1xf32>
    %13 = arith.subf %11, %12 : vector<4x1xf32>
    %cst_7 = arith.constant 0.000000e+00 : f32
    %14 = vector.broadcast %cst_7 : f32 to vector<4x1xf32>
    %15 = arith.maximumf %13, %14 : vector<4x1xf32>
    %cst_8 = arith.constant 9.99999974E-6 : f32
    %16 = vector.broadcast %cst_8 : f32 to vector<4x1xf32>
    %17 = arith.addf %15, %16 : vector<4x1xf32>
    %18 = math.rsqrt %17 : vector<4x1xf32>
    %c0_9 = arith.constant 0 : index
    %c0_10 = arith.constant 0 : index
    %19 = vector.load %arg3[%c0_9, %c0_10] : memref<4x1xf32, #tpu.memory_space<vmem>>, vector<4x1xf32>
    %20 = arith.mulf %19, %18 : vector<4x1xf32>
    %c0_11 = arith.constant 0 : index
    %c0_12 = arith.constant 0 : index
    %21 = vector.load %arg4[%c0_11, %c0_12] : memref<4x1xf32, #tpu.memory_space<vmem>>, vector<4x1xf32>
    %22 = arith.mulf %9, %20 : vector<4x1xf32>
    %23 = arith.subf %21, %22 : vector<4x1xf32>
    %24 = vector.shape_cast %20 : vector<4x1xf32> to vector<1x4x1xf32>
    %25 = vector.broadcast %24 : vector<1x4x1xf32> to vector<2x4x256xf32>
    %26 = arith.mulf %0, %25 : vector<2x4x256xf32>
    %27 = vector.shape_cast %23 : vector<4x1xf32> to vector<1x4x1xf32>
    %28 = vector.broadcast %27 : vector<1x4x1xf32> to vector<2x4x256xf32>
    %29 = arith.addf %26, %28 : vector<2x4x256xf32>
    %cst_13 = arith.constant 0.000000e+00 : f32
    %30 = vector.broadcast %cst_13 : f32 to vector<2x4x256xf32>
    %31 = arith.maximumf %29, %30 : vector<2x4x256xf32>
    %c0_14 = arith.constant 0 : index
    %32 = memref.load %arg1[%c0_14] : memref<1xi32, #tpu.memory_space<smem>>
    %c4_i32 = arith.constant 4 : i32
    %33 = arith.muli %arg0, %c4_i32 : i32
    %34 = tpu.iota {dimensions = array<i32: 0>} : vector<2x4x256xi32>
    %35 = tpu.iota {dimensions = array<i32: 1>} : vector<2x4x256xi32>
    %36 = vector.broadcast %33 : i32 to vector<2x4x256xi32>
    %37 = arith.addi %35, %36 : vector<2x4x256xi32>
    %38 = tpu.iota {dimensions = array<i32: 2>} : vector<2x4x256xi32>
    %c4_i32_15 = arith.constant 4 : i32
    %39 = vector.broadcast %c4_i32_15 : i32 to vector<2x4x256xi32>
    %40 = arith.muli %34, %39 : vector<2x4x256xi32>
    %41 = arith.addi %40, %37 : vector<2x4x256xi32>
    %c256_i32 = arith.constant 256 : i32
    %42 = vector.broadcast %c256_i32 : i32 to vector<2x4x256xi32>
    %43 = arith.muli %41, %42 : vector<2x4x256xi32>
    %44 = arith.addi %43, %38 : vector<2x4x256xi32>
    %c-1640531527_i32 = arith.constant -1640531527 : i32
    %45 = arith.muli %32, %c-1640531527_i32 : i32
    %46 = vector.broadcast %45 : i32 to vector<2x4x256xi32>
    %47 = arith.xori %44, %46 : vector<2x4x256xi32>
    %c16_i32 = arith.constant 16 : i32
    %48 = vector.broadcast %c16_i32 : i32 to vector<2x4x256xi32>
    %49 = arith.shrui %47, %48 : vector<2x4x256xi32>
    %50 = arith.xori %47, %49 : vector<2x4x256xi32>
    %c-2048144789_i32 = arith.constant -2048144789 : i32
    %51 = vector.broadcast %c-2048144789_i32 : i32 to vector<2x4x256xi32>
    %52 = arith.muli %50, %51 : vector<2x4x256xi32>
    %c13_i32 = arith.constant 13 : i32
    %53 = vector.broadcast %c13_i32 : i32 to vector<2x4x256xi32>
    %54 = arith.shrui %52, %53 : vector<2x4x256xi32>
    %55 = arith.xori %52, %54 : vector<2x4x256xi32>
    %c-1028477387_i32 = arith.constant -1028477387 : i32
    %56 = vector.broadcast %c-1028477387_i32 : i32 to vector<2x4x256xi32>
    %57 = arith.muli %55, %56 : vector<2x4x256xi32>
    %c16_i32_16 = arith.constant 16 : i32
    %58 = vector.broadcast %c16_i32_16 : i32 to vector<2x4x256xi32>
    %59 = arith.shrui %57, %58 : vector<2x4x256xi32>
    %60 = arith.xori %57, %59 : vector<2x4x256xi32>
    %c1717986918_i32 = arith.constant 1717986918 : i32
    %61 = vector.broadcast %c1717986918_i32 : i32 to vector<2x4x256xi32>
    %62 = arith.cmpi uge, %60, %61 : vector<2x4x256xi32>
    %cst_17 = arith.constant 0.000000e+00 : f32
    %63 = vector.broadcast %cst_17 : f32 to vector<2x4x256xf32>
    %64 = arith.select %62, %31, %63 : vector<2x4x256xi1>, vector<2x4x256xf32>
    %c0_18 = arith.constant 0 : index
    %c0_19 = arith.constant 0 : index
    %c0_20 = arith.constant 0 : index
    %65 = vector.load %arg5[%c0_18, %c0_19, %c0_20] : memref<2x4x256xf32, #tpu.memory_space<vmem>>, vector<2x4x256xf32>
    tpu.vector_store %arg5[%c0_18, %c0_19, %c0_20], %64 {strides = array<i32>} : memref<2x4x256xf32, #tpu.memory_space<vmem>>, vector<2x4x256xf32>,
    return
  }
  func.func @transform_0(%arg0: i32, %arg1: memref<1xi32, #tpu.memory_space<smem>>) -> (i32, i32, i32) {
    %c0_i32 = arith.constant 0 : i32
    %c0_i32_0 = arith.constant 0 : i32
    %c0_i32_1 = arith.constant 0 : i32
    return %c0_i32, %arg0, %c0_i32_0 : i32, i32, i32
  }
  func.func @transform_1(%arg0: i32, %arg1: memref<1xi32, #tpu.memory_space<smem>>) -> (i32, i32) {
    %c0_i32 = arith.constant 0 : i32
    %c0_i32_0 = arith.constant 0 : i32
    return %arg0, %c0_i32 : i32, i32
  }
  func.func @transform_2(%arg0: i32, %arg1: memref<1xi32, #tpu.memory_space<smem>>) -> (i32, i32) {
    %c0_i32 = arith.constant 0 : i32
    %c0_i32_0 = arith.constant 0 : i32
    return %arg0, %c0_i32 : i32, i32
  }
  func.func @transform_3(%arg0: i32, %arg1: memref<1xi32, #tpu.memory_space<smem>>) -> (i32, i32, i32) {
    %c0_i32 = arith.constant 0 : i32
    %c0_i32_0 = arith.constant 0 : i32
    %c0_i32_1 = arith.constant 0 : i32
    return %c0_i32, %arg0, %c0_i32_0 : i32, i32, i32
  }
}

</mosaic_0001>

<bundles_post_ra>
// kernel: tcn_activation_block.1
= control target key start
LH: loop header
LB: loop body
LE: loop exit
PB: predicated region body
PF: predicated region fallthrough
CT: control target
= control target key end

     0   :  { %vm24_vm0 = vcmask 1043456   ;;  %v187_v26 = vmov 0   ;;  %v74_v41 = vlaneseq  ;;  %s263_s1 = inlined_call_operand.vmem [shape: f32[2,4,256], index: 1, kind: input, shape index: {}]   ;;  %s264_s2 = inlined_call_operand.vmem [shape: f32[4,1], index: 2, kind: input, shape index: {}]   ;;  %s265_s3 = inlined_call_operand.vmem [shape: f32[4,1], index: 3, kind: input, shape index: {}]   ;;  %s266_s0 = inlined_call_operand.<no memory space> [shape: s32[1], index: 0, kind: input, shape index: {}]   ;;  %s267_s4 = inlined_call_operand.vmem [shape: f32[2,4,256], index: 4, kind: output, shape index: {}]  }
   0x1   :  { %v217_v0 = vld [vmem:[%s263_s1] sm:$0xff]  ;;  %v222_v1 = vld [vmem:[%s263_s1 + $0x8] sm:$0xff]  ;;  %181 = vset.pattern.permute.xlu1 %v187_v26  ;;  %182 = vset.pattern.permute.xlu0 %v187_v26 }
   0x2   :  { %v20_v2 = vcombine.high %v217_v0, %v217_v0  ;;  %v21_v3 = vcombine.high %v222_v1, %v222_v1  ;;  %v25_v4 = vsel %vm24_vm0, %v217_v0, 0.0  ;;  %v26_v5 = vsel %vm24_vm0, %v222_v1, 0.0  ;;  %v62_v35 = vld [vmem:[%s264_s2] sm:$0xf]  ;;  %s113_s2 = smul.u32 2654435769, %s266_s0 }
   0x3   :  { %v27_v6 = vadd.f32 %v26_v5, %v25_v4  ;;  %v31_v7 = vmul.f32 %v217_v0, %v217_v0  ;;  %v32_v8 = vmul.f32 %v222_v1, %v222_v1  ;;  %v64_v38 = vld [vmem:[%s265_s3] sm:$0xf]  ;;  %v75_v42 = vshrl.u32 %v74_v41, 7 }
   0x4   :  { %v28_v9 = vsel %vm24_vm0, %v20_v2, 0.0  ;;  %v29_v10 = vsel %vm24_vm0, %v21_v3, 0.0  ;;  %v104_v44 = vand.u32 127, %v74_v41  ;;  %v114_v52 = vstv %s113_s2 }
   0x5   :  { %v30_v11 = vadd.f32 %v29_v10, %v28_v9  ;;  %v45_v12 = vsel %vm24_vm0, %v27_v6, 0.0  ;;  %v35_v13 = vcombine.high %v31_v7, %v31_v7  ;;  %v36_v14 = vcombine.high %v32_v8, %v32_v8 }
   0x6   :  { %v39_v15 = vsel %vm24_vm0, %v31_v7, 0.0  ;;  %v40_v16 = vsel %vm24_vm0, %v32_v8, 0.0  ;;  %v106_v43 = vadd.s32 4, %v75_v42  ;;  %v107_v45 = vmul.u32 256, %v75_v42 }
   0x7   :  { %v46_v17 = vsel %vm24_vm0, %v30_v11, 0.0  ;;  %v41_v18 = vadd.f32 %v40_v16, %v39_v15  ;;  %v42_v19 = vsel %vm24_vm0, %v35_v13, 0.0  ;;  %v43_v20 = vsel %vm24_vm0, %v36_v14, 0.0 }
   0x8   :  { %v47_v21 = vadd.f32 %v46_v17, %v45_v12  ;;  %v44_v22 = vadd.f32 %v43_v20, %v42_v19  ;;  %v108_v46 = vmul.u32 256, %v106_v43  ;;  %v105_v47 = vadd.s32 128, %v104_v44 }
   0x9   :  { %v50_v23 = vsel %vm24_vm0, %v41_v18, 0.0  ;;  %v109_v48 = vadd.s32 %v107_v45, %v104_v44  ;;  %v188_v7 = vmov 839922192  }
   0xa   :  { %48 = vadd.xlane.f32.xlu0 %v47_v21  ;;  %v51_v24 = vsel %vm24_vm0, %v44_v22, 0.0  ;;  %v111_v49 = vadd.s32 %v108_v46, %v104_v44  ;;  %v110_v50 = vadd.s32 %v107_v45, %v105_v47  ;;  %v112_v51 = vadd.s32 %v108_v46, %v105_v47 }
   0xb   :  { %v52_v25 = vadd.f32 %v51_v24, %v50_v23  ;;  %v115_v53 = vxor.u32 %v114_v52, %v109_v48  ;;  %v72_v8 = vunpack.c.l.s4 %v188_v7 }
   0xc   :  { %v117_v54 = vxor.u32 %v114_v52, %v111_v49  ;;  %v116_v55 = vxor.u32 %v114_v52, %v110_v50  ;;  %v118_v56 = vxor.u32 %v114_v52, %v112_v51 }
   0xd   :  { %v119_v57 = vshrl.u32 %v115_v53, 16  ;;  %v73_v13 = vunpack.c.0.s8 %v72_v8 }
   0xe   :  { %53 = vadd.xlane.f32.xlu0 %v52_v25  ;;  %v121_v58 = vshrl.u32 %v117_v54, 16  ;;  %v120_v59 = vshrl.u32 %v116_v55, 16  ;;  %v122_v60 = vshrl.u32 %v118_v56, 16 }
   0xf   :  { %v123_v61 = vxor.u32 %v119_v57, %v115_v53  ;;  %v76_v18 = vsub.s32 %v73_v13, %v75_v42 }
  0x10   :  { %v125_v62 = vxor.u32 %v121_v58, %v117_v54  ;;  %v124_v63 = vxor.u32 %v120_v59, %v116_v55  ;;  %v126_v2 = vxor.u32 %v122_v60, %v118_v56 }
  0x11   :  { %v127_v3 = vmul.u32 2246822507, %v123_v61 }
  0x12   :  { %v129_v4 = vmul.u32 2246822507, %v125_v62  ;;  %v128_v5 = vmul.u32 2246822507, %v124_v63 }
  0x13   :  { %v130_v6 = vmul.u32 2246822507, %v126_v2  ;;  %v131_v9 = vshrl.u32 %v127_v3, 13 }
  0x14   :  { %v133_v10 = vshrl.u32 %v129_v4, 13  ;;  %v132_v11 = vshrl.u32 %v128_v5, 13 }
  0x15   :  { %v134_v12 = vshrl.u32 %v130_v6, 13  ;;  %v135_v14 = vxor.u32 %v131_v9, %v127_v3 }
  0x16   :  { %v137_v15 = vxor.u32 %v133_v10, %v129_v4  ;;  %v136_v16 = vxor.u32 %v132_v11, %v128_v5 }
  0x17   :  { %v138_v17 = vxor.u32 %v134_v12, %v130_v6  ;;  %v139_v19 = vmul.u32 3266489909, %v135_v14 }
  0x18   :  { %v141_v20 = vmul.u32 3266489909, %v137_v15  ;;  %v140_v21 = vmul.u32 3266489909, %v136_v16 }
  0x19   :  { %v142_v22 = vmul.u32 3266489909, %v138_v17  ;;  %v143_v25 = vshrl.u32 %v139_v19, 16 }
  0x1a   :  { %v144_v26 = vshrl.u32 %v140_v21, 16 }
  0x97   :  { %v49_v27 = vpop.xlane.xlu0 %48 }
  0x98   :  { %v55_v28 = vmul.f32 0.001953125, %v49_v27  ;;  %v145_v27 = vshrl.u32 %v141_v20, 16 }
  0x9a   :  { %v57_v30 = vmul.f32 %v55_v28, %v55_v28 }
  0x9b   :  { %v54_v29 = vpop.xlane.xlu0 %53 }
  0x9c   :  { %v56_v31 = vmul.f32 0.001953125, %v54_v29 }
  0x9e   :  { %v58_v32 = vsub.f32 %v56_v31, %v57_v30 }
  0xa0   :  { %v59_v33 = vmax.f32 %v58_v32, 0.0 }
  0xa2   :  { %v60_v34 = vadd.f32 1e-05, %v59_v33  ;;  %v147_v33 = vxor.u32 %v143_v25, %v139_v19 }
  0xa4   :  { %185 = vrsqrt.f32 %v60_v34  ;;  %v148_v34 = vxor.u32 %v144_v26, %v140_v21  ;;  %vm151_vm1 = vcmp.ge.u32.totalorder %v147_v33, 1717986918 }
  0xa6   :  { %vm152_vm2 = vcmp.ge.u32.totalorder %v148_v34, 1717986918 }
  0xae   :  { %v186_v36 = vpop.eup %185 }
  0xaf   :  { %v63_v37 = vmul.f32 %v186_v36, %v62_v35  ;;  %v149_v35 = vxor.u32 %v145_v27, %v141_v20 }
  0xb1   :  { %69 = vperm.xlu1 %181, %v63_v37   ;;  %v65_v39 = vmul.f32 %v63_v37, %v55_v28  ;;  %v146_v28 = vshrl.u32 %v142_v22, 16  ;;  %vm153_vm3 = vcmp.ge.u32.totalorder %v149_v35, 1717986918 }
  0xb3   :  { %v66_v40 = vsub.f32 %v64_v38, %v65_v39  ;;  %v150_v36 = vxor.u32 %v146_v28, %v142_v22 }
  0xb5   :  { %83 = vperm.xlu1 %181, %v66_v40   ;;  %vm154_vm4 = vcmp.ge.u32.totalorder %v150_v36, 1717986918 }
 0x130   :  { %v70_v23 = vpop.permute.xlu1 %69 }
 0x131   :  { %v77_v24 = vrot.slane %v70_v23, %v76_v18 }
 0x133   :  { %v79_v30 = vmul.f32 %v77_v24, %v217_v0  ;;  %v80_v31 = vmul.f32 %v77_v24, %v222_v1 }
 0x134   :  { %v84_v29 = vpop.permute.xlu1 %83 }
 0x135   :  { %v91_v32 = vrot.slane %v84_v29, %v76_v18 }
 0x137   :  { %v93_v37 = vadd.f32 %v91_v32, %v79_v30  ;;  %v94_v38 = vadd.f32 %v91_v32, %v80_v31 }
 0x139   :  { %v95_v39 = vmax.f32 %v93_v37, 0.0  ;;  %v96_v40 = vmax.f32 %v94_v38, 0.0 }
 0x13b   :  { %v157_v41 = vcombine.high %v95_v39, %v95_v39  ;;  %v158_v42 = vcombine.high %v96_v40, %v96_v40  ;;  %v161_v43 = vsel %vm151_vm1, %v95_v39, 0.0  ;;  %v163_v0 = vsel %vm153_vm3, %v96_v40, 0.0 }
 0x13d   :  { %v162_v44 = vsel %vm152_vm2, %v157_v41, 0.0  ;;  %v164_v45 = vsel %vm154_vm4, %v158_v42, 0.0 }
 0x13e   :  { %v169_v1 = vcombine.low %v161_v43, %v162_v44  ;;  %v170_v46 = vcombine.low %v163_v0, %v164_v45 }
 0x140   :  { %173 = vst [vmem:[%s267_s4] sm:$0xff] %v169_v1  ;;  %174 = vst [vmem:[%s267_s4 + $0x8] sm:$0xff] %v170_v46 }

</bundles_post_ra>
